<compile_context>
chip_gen: v6e
topology: v6e:2x2x1
jax: 0.10.0
libtpu: 0.0.40
codegen_flags: <defaults>
</compile_context>

<pallas_src>
import jax
import jax.numpy as jnp
from jax.experimental import pallas as pl
from jax.experimental.pallas import tpu as pltpu

LAYER_NORM_EPS = 1e-12       # BERT default
_INV_SQRT2 = 0.7071067811865476
_VMEM_SLACK = 4 * 1024 * 1024   # headroom for Mosaic-internal scratch


def mlm_head_kernel(x_ref, w1_ref, b1_ref, gamma_ref, beta_ref,
                    w2_ref, bias_ref, out_ref, t_ref):
    """Grid = (row tiles, vocab tiles). The transform (dense + gelu + LN) is computed once
    per row tile (at vocab index 0) and cached in VMEM scratch; every vocab tile reuses it
    for the decoder matmul, so W2 is read from HBM exactly once per row tile.
    NOTE: this j==0 cache is only valid while the vocab axis stays innermost/"arbitrary"."""
    j = pl.program_id(1)

    @pl.when(j == 0)
    def _():
        # dense: x @ W1 + b1  (MXU, f32 accumulate regardless of operand dtype)
        h = jnp.dot(x_ref[...], w1_ref[...], preferred_element_type=jnp.float32)
        h = h + b1_ref[...].astype(jnp.float32)
        # exact (erf-based) gelu, matching torch.nn.functional.gelu default
        h = 0.5 * h * (1.0 + jax.lax.erf(h * _INV_SQRT2))
        # LayerNorm over hidden dim (two-pass mean/var kept for numerical safety; it only
        # runs once per row tile so it is off the hot path).
        mean = jnp.mean(h, axis=-1, keepdims=True)
        var = jnp.mean((h - mean) * (h - mean), axis=-1, keepdims=True)
        h = (h - mean) * jax.lax.rsqrt(var + LAYER_NORM_EPS)
        h = h * gamma_ref[...].astype(jnp.float32) + beta_ref[...].astype(jnp.float32)
        # t is cached at the decoder-weight dtype; with bf16 weights this adds one extra
        # rounding of the transform output vs PyTorch's f32 chain (use a wider tolerance).
        t_ref[...] = h.astype(t_ref.dtype)

    # decoder tile: t @ W2[:, j*tv:(j+1)*tv] + bias[j*tv:(j+1)*tv]
    logits = jnp.dot(t_ref[...], w2_ref[...], preferred_element_type=jnp.float32)
    logits = logits + bias_ref[...].astype(jnp.float32)
    out_ref[...] = logits.astype(out_ref.dtype)


def _round_up(a, m):
    return (a + m - 1) // m * m


def _vmem_budget_bytes():
    """~85% of physical VMEM: ~108 MiB on v5e/v6e (128 MiB), ~54 MiB on v7x (64 MiB)."""
    try:
        cap = int(pltpu.get_tpu_info().vmem_capacity_bytes)
    except Exception:
        cap = 64 * 1024 * 1024   # conservative fallback
    return int(cap * 0.85)


def _choose_tiles(N, H, V, *, tr_req, tv_req, x_bytes, w1_bytes, w2_bytes,
                  t_bytes, out_bytes, budget):
    """Pick (tr, n_pad, tv, v_pad). tr is the largest row tile that fits the VMEM budget
    (so W2 is re-streamed as few times as possible), then row tiles are evened out to
    avoid a nearly-empty padded tail, with >= 2 tiles when there is enough work to feed
    a second TensorCore."""
    n_r = _round_up(max(N, 1), 8)
    tv = min(tv_req, _round_up(V, 128))
    v_pad = _round_up(V, tv)

    # VMEM cost model. The grid-invariant params are counted at 2 buffers so the budget
    # stays valid even if the Buffered(1) request is not honoured.
    fixed = (H * H * w1_bytes * 2          # W1
             + 3 * H * 4 * 2               # b1, gamma, beta
             + H * tv * w2_bytes * 2       # W2 column tile (double-buffered)
             + tv * 4 * 2)                 # vocab bias tile
    per_row = (H * x_bytes * 2             # x row tile (double-buffered)
               + H * t_bytes               # transform cache (scratch, single buffer)
               + tv * out_bytes * 2)       # logits tile (double-buffered)
    avail = budget - _VMEM_SLACK - fixed
    if avail > per_row * 8:
        tr_fit = (avail // per_row) // 8 * 8
    else:
        tr_fit = 8
    if tr_req is not None:
        tr_fit = min(tr_fit, max(8, _round_up(tr_req, 8)))
    tr_fit = min(tr_fit, n_r)

    num_row_tiles = pl.cdiv(n_r, tr_fit)
    # Keep both TensorCores busy on multi-core chips when there is enough work; the extra
    # W2 stream is hidden under >= 1024 rows of MXU work per tile.
    if num_row_tiles == 1 and n_r >= 2048:
        num_row_tiles = 2
    tr = _round_up(pl.cdiv(n_r, num_row_tiles), 8)
    n_pad = num_row_tiles * tr
    return tr, n_pad, tv, v_pad


def mlm_head(x, w1, b1, gamma, beta, w2, bias, *, tr=None, tv=1024, out_dtype=None):
    """x: [B, S, H]; w1: [H, H] (already transposed to [H_in, H_out]); b1/gamma/beta: [H];
    w2: [H, V]; bias: [V].

    Pass bf16 x/w1/w2 for the fast MXU path and halved HBM traffic (accumulation stays
    f32). `tr`/`tv` are optional caps on the row / vocab tiles; by default the row tile is
    auto-sized against the per-generation VMEM budget. `out_dtype=None` follows x.dtype.
    """
    B, S, H = x.shape
    V = w2.shape[1]
    N = B * S
    if out_dtype is None:
        out_dtype = x.dtype

    budget = _vmem_budget_bytes()
    t_dtype = w2.dtype          # decoder matmul (and cached transform) run at W2's dtype
    tr_eff, n_pad, tv_eff, v_pad = _choose_tiles(
        N, H, V, tr_req=tr, tv_req=tv,
        x_bytes=jnp.dtype(x.dtype).itemsize,
        w1_bytes=jnp.dtype(w1.dtype).itemsize,
        w2_bytes=jnp.dtype(w2.dtype).itemsize,
        t_bytes=jnp.dtype(t_dtype).itemsize,
        out_bytes=jnp.dtype(out_dtype).itemsize,
        budget=budget)

    xf = x.reshape(N, H)
    if n_pad != N:
        xf = jnp.pad(xf, ((0, n_pad - N), (0, 0)))
    w2p, biasp = w2, bias
    if v_pad != V:
        w2p = jnp.pad(w2, ((0, 0), (0, v_pad - V)))
        biasp = jnp.pad(bias, ((0, v_pad - V),))

    args = (xf, w1, b1.reshape(1, H), gamma.reshape(1, H), beta.reshape(1, H),
            w2p, biasp.reshape(1, v_pad))

    def call(resident_bufs):
        def const_spec(shape):
            # Grid-invariant operands: DMA'd once; single-buffer them to save VMEM.
            if resident_bufs == 1:
                return pl.BlockSpec(shape, lambda i, j: (0, 0),
                                    pipeline_mode=pl.Buffered(1))
            return pl.BlockSpec(shape, lambda i, j: (0, 0))

        return pl.pallas_call(
            mlm_head_kernel,
            out_shape=jax.ShapeDtypeStruct((n_pad, v_pad), out_dtype),
            grid_spec=pltpu.PrefetchScalarGridSpec(
                num_scalar_prefetch=0,
                grid=(n_pad // tr_eff, v_pad // tv_eff),
                in_specs=[
                    pl.BlockSpec((tr_eff, H), lambda i, j: (i, 0)),   # x rows
                    const_spec((H, H)),                               # W1 (resident)
                    const_spec((1, H)),                               # b1
                    const_spec((1, H)),                               # LN gamma
                    const_spec((1, H)),                               # LN beta
                    pl.BlockSpec((H, tv_eff), lambda i, j: (0, j)),   # decoder weight tile
                    pl.BlockSpec((1, tv_eff), lambda i, j: (0, j)),   # vocab bias tile
                ],
                out_specs=pl.BlockSpec((tr_eff, tv_eff), lambda i, j: (i, j)),
                scratch_shapes=[pltpu.VMEM((tr_eff, H), t_dtype)],
            ),
            compiler_params=pltpu.CompilerParams(
                dimension_semantics=("parallel", "arbitrary"),
                vmem_limit_bytes=budget),
        )(*args)

    try:
        out = call(1)
    except Exception:
        # Fallback if this JAX build rejects single-buffered (Buffered(1)) inputs.
        out = call(2)

    if n_pad != N or v_pad != V:
        out = out[:N, :V]
    return out.reshape(B, S, V)


def mlm_head_ref(x, w1, b1, gamma, beta, w2, bias):
    h = jnp.einsum("bsh,hk->bsk", x, w1) + b1
    h = 0.5 * h * (1.0 + jax.lax.erf(h / jnp.sqrt(2.0)))
    mean = jnp.mean(h, axis=-1, keepdims=True)
    var = jnp.mean((h - mean) ** 2, axis=-1, keepdims=True)
    h = (h - mean) * jax.lax.rsqrt(var + LAYER_NORM_EPS)
    h = h * gamma + beta
    return jnp.einsum("bsh,hv->bsv", h, w2) + bias


if __name__ == "__main__":
    # Small config: batch=2, seq=8, hidden=32, vocab=250 (deliberately not a multiple of
    # 128 to exercise the padding path).
    B, S, H, V = 2, 8, 32, 250
    key = jax.random.PRNGKey(0)
    kx, kw1, kb1, kg, kbt, kw2, kbias = jax.random.split(key, 7)

    x = jax.random.normal(kx, (B, S, H), dtype=jnp.float32)
    # transform.dense: Linear(H, H) stored already transposed to [H_in, H_out]
    w1 = jax.random.normal(kw1, (H, H), dtype=jnp.float32) * 0.05
    b1 = jax.random.normal(kb1, (H,), dtype=jnp.float32) * 0.02
    # transform.LayerNorm
    gamma = 1.0 + 0.1 * jax.random.normal(kg, (H,), dtype=jnp.float32)
    beta = 0.1 * jax.random.normal(kbt, (H,), dtype=jnp.float32)
    # decoder: Linear(H, V, bias=False) stored as [H, V]; separate bias param (zeros in the
    # module, perturbed here so the add is actually exercised)
    w2 = jax.random.normal(kw2, (H, V), dtype=jnp.float32) * 0.05
    bias = 0.01 * jax.random.normal(kbias, (V,), dtype=jnp.float32)

    y_ref = mlm_head_ref(x, w1, b1, gamma, beta, w2, bias)

    # f32 path: strict correctness check.
    y = jax.block_until_ready(mlm_head(x, w1, b1, gamma, beta, w2, bias))
    assert y.shape == (B, S, V), y.shape
    assert jnp.allclose(y, y_ref, rtol=1e-4, atol=1e-4), float(jnp.max(jnp.abs(y - y_ref)))

    # bf16 fast path (halved W2 / logits HBM streams, fast MXU path); looser tolerance
    # because x/W1/W2 and the cached transform are rounded to bf16 (f32 accumulation kept).
    y_bf = mlm_head(x.astype(jnp.bfloat16), w1.astype(jnp.bfloat16), b1, gamma, beta,
                    w2.astype(jnp.bfloat16), bias, out_dtype=jnp.bfloat16)
    y_bf = jax.block_until_ready(y_bf)
    assert y_bf.shape == (B, S, V), y_bf.shape
    assert float(jnp.max(jnp.abs(y_bf.astype(jnp.float32) - y_ref))) < 0.1

    print("KERNEL_OK")
</pallas_src>

<mosaic_0001>
module attributes {stable_mosaic.version = 11 : i64} {
  func.func @mlm_head_kernel(%arg0: i32, %arg1: i32, %arg2: memref<16x32xf32, #tpu.memory_space<vmem>>, %arg3: memref<32x32xf32, #tpu.memory_space<vmem>>, %arg4: memref<1x32xf32, #tpu.memory_space<vmem>>, %arg5: memref<1x32xf32, #tpu.memory_space<vmem>>, %arg6: memref<1x32xf32, #tpu.memory_space<vmem>>, %arg7: memref<32x256xf32, #tpu.memory_space<vmem>>, %arg8: memref<1x256xf32, #tpu.memory_space<vmem>>, %arg9: memref<16x256xf32, #tpu.memory_space<vmem>>, %arg10: memref<16x32xf32, #tpu.memory_space<vmem>>) attributes {dimension_semantics = [#tpu.dimension_semantics<parallel>, #tpu.dimension_semantics<arbitrary>], iteration_bounds = array<i64: 1, 1>, scalar_prefetch = 0 : i64, scratch_operands = 1 : i64, tpu.core_type = #tpu.core_type<tc>, window_params = [{transform_indices = @transform_0, window_bounds = array<i64: 16, 32>}, {pipeline_mode = #tpu.pipeline_mode<synchronous>, transform_indices = @transform_1, window_bounds = array<i64: 32, 32>}, {pipeline_mode = #tpu.pipeline_mode<synchronous>, transform_indices = @transform_2, window_bounds = array<i64: 1, 32>}, {pipeline_mode = #tpu.pipeline_mode<synchronous>, transform_indices = @transform_3, window_bounds = array<i64: 1, 32>}, {pipeline_mode = #tpu.pipeline_mode<synchronous>, transform_indices = @transform_4, window_bounds = array<i64: 1, 32>}, {transform_indices = @transform_5, window_bounds = array<i64: 32, 256>}, {transform_indices = @transform_6, window_bounds = array<i64: 1, 256>}, {transform_indices = @transform_7, window_bounds = array<i64: 16, 256>}]} {
    %c0_i32 = arith.constant 0 : i32
    %0 = arith.cmpi eq, %arg1, %c0_i32 : i32
    %1 = arith.extui %0 : i1 to i32
    %c0_i32_0 = arith.constant 0 : i32
    %2 = arith.cmpi ne, %1, %c0_i32_0 : i32
    scf.if %2 {
      %c0_8 = arith.constant 0 : index
      %c0_9 = arith.constant 0 : index
      %10 = vector.load %arg2[%c0_8, %c0_9] : memref<16x32xf32, #tpu.memory_space<vmem>>, vector<16x32xf32>
      %c0_10 = arith.constant 0 : index
      %c0_11 = arith.constant 0 : index
      %11 = vector.load %arg3[%c0_10, %c0_11] : memref<32x32xf32, #tpu.memory_space<vmem>>, vector<32x32xf32>
      %cst_12 = arith.constant dense<0.000000e+00> : vector<16x32xf32>
      %12 = tpu.matmul %10, %11, %cst_12 {dimension_numbers = #tpu.dot_dimension_numbers<[1], [0], [0], [1], [0, 0, 1, 1], [], []>} : vector<16x32xf32>, vector<32x32xf32>, vector<16x32xf32> -> vector<16x32xf32>
      %c0_13 = arith.constant 0 : index
      %c0_14 = arith.constant 0 : index
      %13 = vector.load %arg4[%c0_13, %c0_14] : memref<1x32xf32, #tpu.memory_space<vmem>>, vector<1x32xf32>
      %14 = vector.broadcast %13 : vector<1x32xf32> to vector<16x32xf32>
      %15 = arith.addf %12, %14 : vector<16x32xf32>
      %cst_15 = arith.constant 5.000000e-01 : f32
      %16 = vector.broadcast %cst_15 : f32 to vector<16x32xf32>
      %17 = arith.mulf %16, %15 : vector<16x32xf32>
      %cst_16 = arith.constant 0.707106769 : f32
      %18 = vector.broadcast %cst_16 : f32 to vector<16x32xf32>
      %19 = arith.mulf %15, %18 : vector<16x32xf32>
      %20 = math.erf %19 : vector<16x32xf32>
      %cst_17 = arith.constant 1.000000e+00 : f32
      %21 = vector.broadcast %cst_17 : f32 to vector<16x32xf32>
      %22 = arith.addf %21, %20 : vector<16x32xf32>
      %23 = arith.mulf %17, %22 : vector<16x32xf32>
      %cst_18 = arith.constant dense<0.000000e+00> : vector<16xf32>
      %24 = vector.multi_reduction <add>, %23, %cst_18 [1] : vector<16x32xf32> to vector<16xf32>
      %25 = vector.shape_cast %24 : vector<16xf32> to vector<16x1xf32>
      %cst_19 = arith.constant 3.200000e+01 : f32
      %26 = vector.broadcast %cst_19 : f32 to vector<16x1xf32>
      %27 = arith.divf %25, %26 : vector<16x1xf32>
      %28 = vector.broadcast %27 : vector<16x1xf32> to vector<16x32xf32>
      %29 = arith.subf %23, %28 : vector<16x32xf32>
      %30 = vector.broadcast %27 : vector<16x1xf32> to vector<16x32xf32>
      %31 = arith.subf %23, %30 : vector<16x32xf32>
      %32 = arith.mulf %29, %31 : vector<16x32xf32>
      %cst_20 = arith.constant dense<0.000000e+00> : vector<16xf32>
      %33 = vector.multi_reduction <add>, %32, %cst_20 [1] : vector<16x32xf32> to vector<16xf32>
      %34 = vector.shape_cast %33 : vector<16xf32> to vector<16x1xf32>
      %cst_21 = arith.constant 3.200000e+01 : f32
      %35 = vector.broadcast %cst_21 : f32 to vector<16x1xf32>
      %36 = arith.divf %34, %35 : vector<16x1xf32>
      %37 = vector.broadcast %27 : vector<16x1xf32> to vector<16x32xf32>
      %38 = arith.subf %23, %37 : vector<16x32xf32>
      %cst_22 = arith.constant 9.99999996E-13 : f32
      %39 = vector.broadcast %cst_22 : f32 to vector<16x1xf32>
      %40 = arith.addf %36, %39 : vector<16x1xf32>
      %41 = math.rsqrt %40 : vector<16x1xf32>
      %42 = vector.broadcast %41 : vector<16x1xf32> to vector<16x32xf32>
      %43 = arith.mulf %38, %42 : vector<16x32xf32>
      %c0_23 = arith.constant 0 : index
      %c0_24 = arith.constant 0 : index
      %44 = vector.load %arg5[%c0_23, %c0_24] : memref<1x32xf32, #tpu.memory_space<vmem>>, vector<1x32xf32>
      %45 = vector.broadcast %44 : vector<1x32xf32> to vector<16x32xf32>
      %46 = arith.mulf %43, %45 : vector<16x32xf32>
      %c0_25 = arith.constant 0 : index
      %c0_26 = arith.constant 0 : index
      %47 = vector.load %arg6[%c0_25, %c0_26] : memref<1x32xf32, #tpu.memory_space<vmem>>, vector<1x32xf32>
      %48 = vector.broadcast %47 : vector<1x32xf32> to vector<16x32xf32>
      %49 = arith.addf %46, %48 : vector<16x32xf32>
      %c0_27 = arith.constant 0 : index
      %c0_28 = arith.constant 0 : index
      %50 = vector.load %arg10[%c0_27, %c0_28] : memref<16x32xf32, #tpu.memory_space<vmem>>, vector<16x32xf32>
      tpu.vector_store %arg10[%c0_27, %c0_28], %49 {strides = array<i32>} : memref<16x32xf32, #tpu.memory_space<vmem>>, vector<16x32xf32>,
    } else {
    }
    %c0 = arith.constant 0 : index
    %c0_1 = arith.constant 0 : index
    %3 = vector.load %arg10[%c0, %c0_1] : memref<16x32xf32, #tpu.memory_space<vmem>>, vector<16x32xf32>
    %c0_2 = arith.constant 0 : index
    %c0_3 = arith.constant 0 : index
    %4 = vector.load %arg7[%c0_2, %c0_3] : memref<32x256xf32, #tpu.memory_space<vmem>>, vector<32x256xf32>
    %cst = arith.constant dense<0.000000e+00> : vector<16x256xf32>
    %5 = tpu.matmul %3, %4, %cst {dimension_numbers = #tpu.dot_dimension_numbers<[1], [0], [0], [1], [0, 0, 1, 1], [], []>} : vector<16x32xf32>, vector<32x256xf32>, vector<16x256xf32> -> vector<16x256xf32>
    %c0_4 = arith.constant 0 : index
    %c0_5 = arith.constant 0 : index
    %6 = vector.load %arg8[%c0_4, %c0_5] : memref<1x256xf32, #tpu.memory_space<vmem>>, vector<1x256xf32>
    %7 = vector.broadcast %6 : vector<1x256xf32> to vector<16x256xf32>
    %8 = arith.addf %5, %7 : vector<16x256xf32>
    %c0_6 = arith.constant 0 : index
    %c0_7 = arith.constant 0 : index
    %9 = vector.load %arg9[%c0_6, %c0_7] : memref<16x256xf32, #tpu.memory_space<vmem>>, vector<16x256xf32>
    tpu.vector_store %arg9[%c0_6, %c0_7], %8 {strides = array<i32>} : memref<16x256xf32, #tpu.memory_space<vmem>>, vector<16x256xf32>,
    return
  }
  func.func @transform_0(%arg0: i32, %arg1: i32) -> (i32, i32) {
    %c0_i32 = arith.constant 0 : i32
    %c0_i32_0 = arith.constant 0 : i32
    return %arg0, %c0_i32 : i32, i32
  }
  func.func @transform_1(%arg0: i32, %arg1: i32) -> (i32, i32) {
    %c0_i32 = arith.constant 0 : i32
    %c0_i32_0 = arith.constant 0 : i32
    %c0_i32_1 = arith.constant 0 : i32
    return %c0_i32, %c0_i32_0 : i32, i32
  }
  func.func @transform_2(%arg0: i32, %arg1: i32) -> (i32, i32) {
    %c0_i32 = arith.constant 0 : i32
    %c0_i32_0 = arith.constant 0 : i32
    %c0_i32_1 = arith.constant 0 : i32
    return %c0_i32, %c0_i32_0 : i32, i32
  }
  func.func @transform_3(%arg0: i32, %arg1: i32) -> (i32, i32) {
    %c0_i32 = arith.constant 0 : i32
    %c0_i32_0 = arith.constant 0 : i32
    %c0_i32_1 = arith.constant 0 : i32
    return %c0_i32, %c0_i32_0 : i32, i32
  }
  func.func @transform_4(%arg0: i32, %arg1: i32) -> (i32, i32) {
    %c0_i32 = arith.constant 0 : i32
    %c0_i32_0 = arith.constant 0 : i32
    %c0_i32_1 = arith.constant 0 : i32
    return %c0_i32, %c0_i32_0 : i32, i32
  }
  func.func @transform_5(%arg0: i32, %arg1: i32) -> (i32, i32) {
    %c0_i32 = arith.constant 0 : i32
    %c0_i32_0 = arith.constant 0 : i32
    return %c0_i32, %arg1 : i32, i32
  }
  func.func @transform_6(%arg0: i32, %arg1: i32) -> (i32, i32) {
    %c0_i32 = arith.constant 0 : i32
    %c0_i32_0 = arith.constant 0 : i32
    return %c0_i32, %arg1 : i32, i32
  }
  func.func @transform_7(%arg0: i32, %arg1: i32) -> (i32, i32) {
    %c0_i32 = arith.constant 0 : i32
    return %arg0, %arg1 : i32, i32
  }
}

module attributes {stable_mosaic.version = 11 : i64} {
  func.func @mlm_head_kernel(%arg0: i32, %arg1: i32, %arg2: memref<16x32xf32, #tpu.memory_space<vmem>>, %arg3: memref<32x32xf32, #tpu.memory_space<vmem>>, %arg4: memref<1x32xf32, #tpu.memory_space<vmem>>, %arg5: memref<1x32xf32, #tpu.memory_space<vmem>>, %arg6: memref<1x32xf32, #tpu.memory_space<vmem>>, %arg7: memref<32x256xf32, #tpu.memory_space<vmem>>, %arg8: memref<1x256xf32, #tpu.memory_space<vmem>>, %arg9: memref<16x256xf32, #tpu.memory_space<vmem>>, %arg10: memref<16x32xf32, #tpu.memory_space<vmem>>) attributes {dimension_semantics = [#tpu.dimension_semantics<parallel>, #tpu.dimension_semantics<arbitrary>], iteration_bounds = array<i64: 1, 1>, scalar_prefetch = 0 : i64, scratch_operands = 1 : i64, tpu.core_type = #tpu.core_type<tc>, window_params = [{transform_indices = @transform_0, window_bounds = array<i64: 16, 32>}, {pipeline_mode = #tpu.pipeline_mode<synchronous>, transform_indices = @transform_1, window_bounds = array<i64: 32, 32>}, {pipeline_mode = #tpu.pipeline_mode<synchronous>, transform_indices = @transform_2, window_bounds = array<i64: 1, 32>}, {pipeline_mode = #tpu.pipeline_mode<synchronous>, transform_indices = @transform_3, window_bounds = array<i64: 1, 32>}, {pipeline_mode = #tpu.pipeline_mode<synchronous>, transform_indices = @transform_4, window_bounds = array<i64: 1, 32>}, {transform_indices = @transform_5, window_bounds = array<i64: 32, 256>}, {transform_indices = @transform_6, window_bounds = array<i64: 1, 256>}, {transform_indices = @transform_7, window_bounds = array<i64: 16, 256>}]} {
    %c0_i32 = arith.constant 0 : i32
    %0 = arith.cmpi eq, %arg1, %c0_i32 : i32
    %1 = arith.extui %0 : i1 to i32
    %c0_i32_0 = arith.constant 0 : i32
    %2 = arith.cmpi ne, %1, %c0_i32_0 : i32
    scf.if %2 {
      %c0_8 = arith.constant 0 : index
      %c0_9 = arith.constant 0 : index
      %10 = vector.load %arg2[%c0_8, %c0_9] : memref<16x32xf32, #tpu.memory_space<vmem>>, vector<16x32xf32>
      %c0_10 = arith.constant 0 : index
      %c0_11 = arith.constant 0 : index
      %11 = vector.load %arg3[%c0_10, %c0_11] : memref<32x32xf32, #tpu.memory_space<vmem>>, vector<32x32xf32>
      %cst_12 = arith.constant dense<0.000000e+00> : vector<16x32xf32>
      %12 = tpu.matmul %10, %11, %cst_12 {dimension_numbers = #tpu.dot_dimension_numbers<[1], [0], [0], [1], [0, 0, 1, 1], [], []>} : vector<16x32xf32>, vector<32x32xf32>, vector<16x32xf32> -> vector<16x32xf32>
      %c0_13 = arith.constant 0 : index
      %c0_14 = arith.constant 0 : index
      %13 = vector.load %arg4[%c0_13, %c0_14] : memref<1x32xf32, #tpu.memory_space<vmem>>, vector<1x32xf32>
      %14 = vector.broadcast %13 : vector<1x32xf32> to vector<16x32xf32>
      %15 = arith.addf %12, %14 : vector<16x32xf32>
      %cst_15 = arith.constant 5.000000e-01 : f32
      %16 = vector.broadcast %cst_15 : f32 to vector<16x32xf32>
      %17 = arith.mulf %16, %15 : vector<16x32xf32>
      %cst_16 = arith.constant 0.707106769 : f32
      %18 = vector.broadcast %cst_16 : f32 to vector<16x32xf32>
      %19 = arith.mulf %15, %18 : vector<16x32xf32>
      %20 = math.erf %19 : vector<16x32xf32>
      %cst_17 = arith.constant 1.000000e+00 : f32
      %21 = vector.broadcast %cst_17 : f32 to vector<16x32xf32>
      %22 = arith.addf %21, %20 : vector<16x32xf32>
      %23 = arith.mulf %17, %22 : vector<16x32xf32>
      %cst_18 = arith.constant dense<0.000000e+00> : vector<16xf32>
      %24 = vector.multi_reduction <add>, %23, %cst_18 [1] : vector<16x32xf32> to vector<16xf32>
      %25 = vector.shape_cast %24 : vector<16xf32> to vector<16x1xf32>
      %cst_19 = arith.constant 3.200000e+01 : f32
      %26 = vector.broadcast %cst_19 : f32 to vector<16x1xf32>
      %27 = arith.divf %25, %26 : vector<16x1xf32>
      %28 = vector.broadcast %27 : vector<16x1xf32> to vector<16x32xf32>
      %29 = arith.subf %23, %28 : vector<16x32xf32>
      %30 = vector.broadcast %27 : vector<16x1xf32> to vector<16x32xf32>
      %31 = arith.subf %23, %30 : vector<16x32xf32>
      %32 = arith.mulf %29, %31 : vector<16x32xf32>
      %cst_20 = arith.constant dense<0.000000e+00> : vector<16xf32>
      %33 = vector.multi_reduction <add>, %32, %cst_20 [1] : vector<16x32xf32> to vector<16xf32>
      %34 = vector.shape_cast %33 : vector<16xf32> to vector<16x1xf32>
      %cst_21 = arith.constant 3.200000e+01 : f32
      %35 = vector.broadcast %cst_21 : f32 to vector<16x1xf32>
      %36 = arith.divf %34, %35 : vector<16x1xf32>
      %37 = vector.broadcast %27 : vector<16x1xf32> to vector<16x32xf32>
      %38 = arith.subf %23, %37 : vector<16x32xf32>
      %cst_22 = arith.constant 9.99999996E-13 : f32
      %39 = vector.broadcast %cst_22 : f32 to vector<16x1xf32>
      %40 = arith.addf %36, %39 : vector<16x1xf32>
      %41 = math.rsqrt %40 : vector<16x1xf32>
      %42 = vector.broadcast %41 : vector<16x1xf32> to vector<16x32xf32>
      %43 = arith.mulf %38, %42 : vector<16x32xf32>
      %c0_23 = arith.constant 0 : index
      %c0_24 = arith.constant 0 : index
      %44 = vector.load %arg5[%c0_23, %c0_24] : memref<1x32xf32, #tpu.memory_space<vmem>>, vector<1x32xf32>
      %45 = vector.broadcast %44 : vector<1x32xf32> to vector<16x32xf32>
      %46 = arith.mulf %43, %45 : vector<16x32xf32>
      %c0_25 = arith.constant 0 : index
      %c0_26 = arith.constant 0 : index
      %47 = vector.load %arg6[%c0_25, %c0_26] : memref<1x32xf32, #tpu.memory_space<vmem>>, vector<1x32xf32>
      %48 = vector.broadcast %47 : vector<1x32xf32> to vector<16x32xf32>
      %49 = arith.addf %46, %48 : vector<16x32xf32>
      %c0_27 = arith.constant 0 : index
      %c0_28 = arith.constant 0 : index
      %50 = vector.load %arg10[%c0_27, %c0_28] : memref<16x32xf32, #tpu.memory_space<vmem>>, vector<16x32xf32>
      tpu.vector_store %arg10[%c0_27, %c0_28], %49 {strides = array<i32>} : memref<16x32xf32, #tpu.memory_space<vmem>>, vector<16x32xf32>,
    } else {
    }
    %c0 = arith.constant 0 : index
    %c0_1 = arith.constant 0 : index
    %3 = vector.load %arg10[%c0, %c0_1] : memref<16x32xf32, #tpu.memory_space<vmem>>, vector<16x32xf32>
    %c0_2 = arith.constant 0 : index
    %c0_3 = arith.constant 0 : index
    %4 = vector.load %arg7[%c0_2, %c0_3] : memref<32x256xf32, #tpu.memory_space<vmem>>, vector<32x256xf32>
    %cst = arith.constant dense<0.000000e+00> : vector<16x256xf32>
    %5 = tpu.matmul %3, %4, %cst {dimension_numbers = #tpu.dot_dimension_numbers<[1], [0], [0], [1], [0, 0, 1, 1], [], []>} : vector<16x32xf32>, vector<32x256xf32>, vector<16x256xf32> -> vector<16x256xf32>
    %c0_4 = arith.constant 0 : index
    %c0_5 = arith.constant 0 : index
    %6 = vector.load %arg8[%c0_4, %c0_5] : memref<1x256xf32, #tpu.memory_space<vmem>>, vector<1x256xf32>
    %7 = vector.broadcast %6 : vector<1x256xf32> to vector<16x256xf32>
    %8 = arith.addf %5, %7 : vector<16x256xf32>
    %c0_6 = arith.constant 0 : index
    %c0_7 = arith.constant 0 : index
    %9 = vector.load %arg9[%c0_6, %c0_7] : memref<16x256xf32, #tpu.memory_space<vmem>>, vector<16x256xf32>
    tpu.vector_store %arg9[%c0_6, %c0_7], %8 {strides = array<i32>} : memref<16x256xf32, #tpu.memory_space<vmem>>, vector<16x256xf32>,
    return
  }
  func.func @transform_0(%arg0: i32, %arg1: i32) -> (i32, i32) {
    %c0_i32 = arith.constant 0 : i32
    %c0_i32_0 = arith.constant 0 : i32
    return %arg0, %c0_i32 : i32, i32
  }
  func.func @transform_1(%arg0: i32, %arg1: i32) -> (i32, i32) {
    %c0_i32 = arith.constant 0 : i32
    %c0_i32_0 = arith.constant 0 : i32
    %c0_i32_1 = arith.constant 0 : i32
    return %c0_i32, %c0_i32_0 : i32, i32
  }
  func.func @transform_2(%arg0: i32, %arg1: i32) -> (i32, i32) {
    %c0_i32 = arith.constant 0 : i32
    %c0_i32_0 = arith.constant 0 : i32
    %c0_i32_1 = arith.constant 0 : i32
    return %c0_i32, %c0_i32_0 : i32, i32
  }
  func.func @transform_3(%arg0: i32, %arg1: i32) -> (i32, i32) {
    %c0_i32 = arith.constant 0 : i32
    %c0_i32_0 = arith.constant 0 : i32
    %c0_i32_1 = arith.constant 0 : i32
    return %c0_i32, %c0_i32_0 : i32, i32
  }
  func.func @transform_4(%arg0: i32, %arg1: i32) -> (i32, i32) {
    %c0_i32 = arith.constant 0 : i32
    %c0_i32_0 = arith.constant 0 : i32
    %c0_i32_1 = arith.constant 0 : i32
    return %c0_i32, %c0_i32_0 : i32, i32
  }
  func.func @transform_5(%arg0: i32, %arg1: i32) -> (i32, i32) {
    %c0_i32 = arith.constant 0 : i32
    %c0_i32_0 = arith.constant 0 : i32
    return %c0_i32, %arg1 : i32, i32
  }
  func.func @transform_6(%arg0: i32, %arg1: i32) -> (i32, i32) {
    %c0_i32 = arith.constant 0 : i32
    %c0_i32_0 = arith.constant 0 : i32
    return %c0_i32, %arg1 : i32, i32
  }
  func.func @transform_7(%arg0: i32, %arg1: i32) -> (i32, i32) {
    %c0_i32 = arith.constant 0 : i32
    return %arg0, %arg1 : i32, i32
  }
}

</mosaic_0001>

<bundles_post_ra>
// kernel: tpu_custom_call.1
= control target key start
LH: loop header
LB: loop body
LE: loop exit
PB: predicated region body
PF: predicated region fallthrough
CT: control target
= control target key end

     0   :  { %12 = vsyncpa [#allocation4], 0  ;;  %s568_s0 = inlined_call_operand.hbm [shape: f32[16,32], index: 0, kind: input, shape index: {}]   ;;  %s569_s1 = inlined_call_operand.hbm [shape: f32[32,32], index: 1, kind: input, shape index: {}]   ;;  %s570_s2 = inlined_call_operand.vmem [shape: f32[1,32], index: 2, kind: input, shape index: {}]   ;;  %s571_s3 = inlined_call_operand.vmem [shape: f32[1,32], index: 3, kind: input, shape index: {}]   ;;  %s572_s4 = inlined_call_operand.vmem [shape: f32[1,32], index: 4, kind: input, shape index: {}]   ;;  %s573_s5 = inlined_call_operand.hbm [shape: f32[32,256], index: 5, kind: input, shape index: {}]   ;;  %s574_s6 = inlined_call_operand.vmem [shape: f32[1,256], index: 6, kind: input, shape index: {}]   ;;  %s575_s7 = inlined_call_operand.hbm [shape: f32[16,256], index: 7, kind: output, shape index: {}]  }
   0x1   :  { %13 = vsyncpa [#allocation7], 0 }
   0x2   :  { %14 = vsyncpa [#allocation5], 0  ;;  %s479_s24 = smov [#allocation6]   ;;  %s480_s26 = smov [#allocation3]  }
   0x3   :  { %s32_s25 = sshll.u32 %s479_s24, 4  ;;  %s20_s27 = sshll.u32 %s480_s26, 4  ;;  %s33_s25 = int_to_ptr.vmem [resolvable:$true] %s32_s25  ;;  %s21_s27 = int_to_ptr.vmem [resolvable:$true] %s20_s27 }
   0x4   :  { %s401_s28 = scalar_lea.vmem %s33_s25, 512  ;;  %p406_p1 = scmp.lt.s32.totalorder %s33_s25, %s33_s25 }
   0x5   :  { %p402_p0 = scmp.ne.s32.totalorder %s33_s25, %s401_s28  ;;  %p407_p2 = scmp.lt.s32.totalorder %s401_s28, %s401_s28 }
   0x7   :  { %p408_p3 = por %p407_p2, %p406_p1 }
   0x9   :  { %p409_p4 = pnand %p408_p3, %p402_p0 }
   0xb   :  { %412 = shalt.err (!%p409_p4)
}
   0xc   :  { %s481_s29 = smov 128   ;;  %s482_s30 = smov 8  }
   0xd   :  { %38 = dma.hbm_to_vmem [thread:$0]  %s569_s1, 512, %s33_s25, [#allocation7], %s481_s29, %s481_s29, %s482_s30  }
   0xe   :  { %s421_s10 = scalar_lea.vmem %s21_s27, 256  ;;  %p426_p6 = scmp.lt.s32.totalorder %s21_s27, %s21_s27 }
   0xf   :  { %p422_p5 = scmp.ne.s32.totalorder %s21_s27, %s421_s10  ;;  %p427_p7 = scmp.lt.s32.totalorder %s421_s10, %s421_s10 }
  0x11   :  { %p428_p8 = por %p427_p7, %p426_p6 }
  0x13   :  { %p429_p9 = pnand %p428_p8, %p422_p5 }
  0x15   :  { %432 = shalt.err (!%p429_p9)
}
  0x16   :  { %26 = dma.hbm_to_vmem [thread:$0]  %s568_s0, 256, %s21_s27, [#allocation4], %s481_s29, %s481_s29, %s482_s30  }
  0x17   :  { %s483_s13 = smov [#allocation8]  }
  0x18   :  { %s50_s14 = sshll.u32 %s483_s13, 4  ;;  %s51_s14 = int_to_ptr.vmem [resolvable:$true] %s50_s14 }
  0x19   :  { %s441_s15 = scalar_lea.vmem %s51_s14, 1024  ;;  %p446_p11 = scmp.lt.s32.totalorder %s51_s14, %s51_s14 }
  0x1a   :  { %p442_p10 = scmp.ne.s32.totalorder %s51_s14, %s441_s15  ;;  %p447_p12 = scmp.lt.s32.totalorder %s441_s15, %s441_s15 }
  0x1c   :  { %p448_p13 = por %p447_p12, %p446_p11 }
  0x1e   :  { %p449_p0 = pnand %p448_p13, %p442_p10 }
  0x20   :  { %452 = shalt.err (!%p449_p0)
}
  0x21   :  { %s484_s1 = smov 256   ;;  %s485_s16 = smov 16  }
  0x22   :  { %56 = dma.hbm_to_vmem [thread:$0]  %s573_s5, 1024, %s51_s14, [#allocation7], %s484_s1, %s484_s1, %s485_s16  }
  0x23   :  { %473 = dma.done.wait [#allocation4], 256  }
  0x24   :  { %474 = vsyncadd [#allocation4], 4294967040 }
  0x25   :  { %475 = dma.done.wait [#allocation7], 1536  }
  0x26   :  { %476 = vsyncadd [#allocation7], 4294965760  ;;  %vm85_vm0 = vcmask 261120   ;;  %v77_v0 = vld [vmem:[#allocation6 + $0x18] sm:$0xff]  ;;  %v76_v1 = vld [vmem:[#allocation6 + $0x10] sm:$0xff]  ;;  %v486_v41 = vmov 0.0   ;;  %v236_v60 = vlaneseq }
  0x27   :  { %365 = vmatprep.subr.mxu0 %v77_v0  ;;  %v72_v2 = vld [vmem:[#allocation3] sm:$0xff]  ;;  %v75_v3 = vld [vmem:[#allocation6 + $0x8] sm:$0xff]  ;;  %v74_v4 = vld [vmem:[#allocation6] sm:$0xff]  ;;  %317 = vmatprep.mubr.f32.mxu1 %v486_v41  ;;  %s487_s22 = smov [#allocation9]  }
  0x28   :  { %366 = vmatpush3.msra.mxu0 %v77_v0  ;;  %373 = vmatprep.mubr.msk.f32.mxu0 %vm85_vm0, %v72_v2  ;;  %v73_v5 = vld [vmem:[#allocation3 + $0x8] sm:$0xff]  ;;  %v352_v6 = vld [vmem:[%s570_s2] ss:$0 sm:$0xff]  ;;  %v232_v34 = vld [vmem:[#allocation8 + $0x30] sm:$0xff]  ;;  %v237_v61 = vshrl.u32 %v236_v60, 7  ;;  %s339_s23 = sshll.u32 %s487_s22, 4  ;;  %s340_s23 = int_to_ptr.vmem [resolvable:$true] %s339_s23 }
  0x29   :  { %367 = vmatprep.subr.mxu0 %v76_v1  ;;  %v233_v33 = vld [vmem:[#allocation8 + $0x38] sm:$0xff]  ;;  %v231_v35 = vld [vmem:[#allocation8 + $0x28] sm:$0xff]  ;;  %v230_v36 = vld [vmem:[#allocation8 + $0x20] sm:$0xff]  ;;  %s453_s24 = scalar_lea.vmem %s340_s23, 512  ;;  %p458_p2 = scmp.lt.s32.totalorder %s340_s23, %s340_s23 }
  0x2a   :  { %368 = vmatpush3.msra.mxu0 %v76_v1  ;;  %277 = vmatprep.subr.mxu1 %v233_v33  ;;  %v229_v37 = vld [vmem:[#allocation8 + $0x18] sm:$0xff]  ;;  %v228_v38 = vld [vmem:[#allocation8 + $0x10] sm:$0xff]  ;;  %v227_v39 = vld [vmem:[#allocation8 + $0x8] sm:$0xff]  ;;  %v238_v62 = vsub.s32 0, %v237_v61  ;;  %v242_v0 = vsub.s32 1, %v237_v61  ;;  %p454_p1 = scmp.ne.s32.totalorder %s340_s23, %s453_s24  ;;  %p459_p3 = scmp.lt.s32.totalorder %s453_s24, %s453_s24 }
  0x2b   :  { %369 = vmatprep.subr.mxu0 %v75_v3  ;;  %278 = vmatpush1.msra.mxu1 %v232_v34  ;;  %v226_v40 = vld [vmem:[#allocation8] sm:$0xff] }
  0x2c   :  { %370 = vmatpush3.msra.mxu0 %v75_v3  ;;  %279 = vmatprep.subr.mxu1 %v231_v35  ;;  %v355_v49 = vld [vmem:[%s571_s3] ss:$0 sm:$0xff]  ;;  %p460_p4 = por %p459_p3, %p458_p2 }
  0x2d   :  { %371 = vmatprep.subr.mxu0 %v74_v4  ;;  %280 = vmatpush1.msra.mxu1 %v230_v36  ;;  %v356_v51 = vld [vmem:[%s572_s4] ss:$0 sm:$0xff] }
  0x2e   :  { %372 = vmatpush3.msra.mxu0 %v74_v4  ;;  %281 = vmatprep.subr.mxu1 %v229_v37  ;;  %v234_v63 = vld [vmem:[%s574_s6] sm:$0x3]  ;;  %p461_p5 = pnand %p460_p4, %p454_p1 }
  0x2f   :  { %374 = vmatmul.mubr.msk.f32.vlgmr.msra.gmra.mxu0 %vm85_vm0, %v73_v5  ;;  %282 = vmatpush1.msra.mxu1 %v228_v38  ;;  %v239_v1 = vrot.slane %v234_v63, %v238_v62  ;;  %v243_v2 = vrot.slane %v234_v63, %v242_v0 }
  0x30   :  { %283 = vmatprep.subr.mxu1 %v227_v39 }
  0x31   :  { %284 = vmatpush1.msra.mxu1 %v226_v40 }
  0xef   :  { %v375_v7 = vpop.f32.mrf.mxu0 }
  0xf0   :  { %v164_v8 = vadd.f32 %v375_v7, %v352_v6 }
  0xf1   :  { %v158_v9 = vpop.f32.mrf.mxu0 }
  0xf2   :  { %v170_v10 = vmul.f32 0.70710677, %v164_v8  ;;  %v159_v11 = vadd.f32 %v352_v6, %v158_v9  ;;  %v168_v18 = vmul.f32 0.5, %v164_v8 }
  0xf4   :  { %385 = verf.f32 %v170_v10  ;;  %v169_v12 = vmul.f32 0.70710677, %v159_v11  ;;  %v167_v15 = vmul.f32 0.5, %v159_v11 }
  0xf6   :  { %387 = verf.f32 %v169_v12 }
 0x101   :  { %v386_v13 = vpop.eup %385 }
 0x102   :  { %v174_v17 = vadd.f32 1.0, %v386_v13 }
 0x103   :  { %v388_v14 = vpop.eup %387 }
 0x104   :  { %v173_v16 = vadd.f32 1.0, %v388_v14  ;;  %v176_v21 = vmul.f32 %v174_v17, %v168_v18 }
 0x106   :  { %v175_v19 = vmul.f32 %v173_v16, %v167_v15  ;;  %v180_v22 = vsel %vm85_vm0, %v176_v21, 0.0 }
 0x108   :  { %v177_v20 = vsel %vm85_vm0, %v175_v19, 0.0 }
 0x109   :  { %178 = vadd.xlane.f32.xlu0 %v177_v20 }
 0x10d   :  { %181 = vadd.xlane.f32.xlu0 %v180_v22 }
 0x192   :  { %v179_v23 = vpop.xlane.xlu0 %178 }
 0x193   :  { %v184_v24 = vmul.f32 0.03125, %v179_v23 }
 0x195   :  { %v186_v25 = vsub.f32 %v175_v19, %v184_v24 }
 0x196   :  { %v182_v26 = vpop.xlane.xlu0 %181 }
 0x197   :  { %v185_v27 = vmul.f32 0.03125, %v182_v26  ;;  %v188_v28 = vmul.f32 %v186_v25, %v186_v25 }
 0x199   :  { %v187_v29 = vsub.f32 %v176_v21, %v185_v27  ;;  %v190_v30 = vsel %vm85_vm0, %v188_v28, 0.0 }
 0x19a   :  { %191 = vadd.xlane.f32.xlu1 %v190_v30 }
 0x19b   :  { %v189_v31 = vmul.f32 %v187_v29, %v187_v29 }
 0x19d   :  { %v193_v32 = vsel %vm85_vm0, %v189_v31, 0.0 }
 0x19e   :  { %194 = vadd.xlane.f32.xlu1 %v193_v32 }
 0x223   :  { %v192_v42 = vpop.xlane.xlu1 %191 }
 0x224   :  { %v196_v43 = vmul.f32 0.03125, %v192_v42 }
 0x226   :  { %v198_v44 = vadd.f32 1e-12, %v196_v43 }
 0x227   :  { %v195_v45 = vpop.xlane.xlu1 %194 }
 0x228   :  { %389 = vrsqrt.f32 %v198_v44  ;;  %v197_v46 = vmul.f32 0.03125, %v195_v45 }
 0x22a   :  { %v199_v47 = vadd.f32 1e-12, %v197_v46 }
 0x22c   :  { %391 = vrsqrt.f32 %v199_v47 }
 0x235   :  { %v390_v48 = vpop.eup %389 }
 0x236   :  { %v202_v50 = vmul.f32 %v390_v48, %v186_v25 }
 0x238   :  { %v211_v52 = vmul.f32 %v355_v49, %v202_v50 }
 0x239   :  { %v392_v53 = vpop.eup %391 }
 0x23a   :  { %v220_v54 = vadd.f32 %v356_v51, %v211_v52  ;;  %v203_v55 = vmul.f32 %v392_v53, %v187_v29 }
 0x23c   :  { %222 = vst.msk [vmem:[#allocation2] sm:$0xff] %vm85_vm0, %v220_v54  ;;  %v212_v56 = vmul.f32 %v355_v49, %v203_v55 }
 0x23e   :  { %v221_v57 = vadd.f32 %v356_v51, %v212_v56 }
 0x240   :  { %223 = vst.msk [vmem:[#allocation2 + $0x8] sm:$0xff] %vm85_vm0, %v221_v57 }
 0x243   :  { %v224_v58 = vld [vmem:[#allocation2] sm:$0xff] }
 0x244   :  { %357 = vmatmul.mubr.msk.f32.vlgmr.msra.gmra.mxu1 %vm85_vm0, %v224_v58 }
 0x245   :  { %323 = vmatprep.mubr.f32.mxu1 %v486_v41 }
 0x247   :  { %v225_v59 = vld [vmem:[#allocation2 + $0x8] sm:$0xff] }
 0x248   :  { %358 = vmatmul.mubr.msk.f32.gmra.mxu1 %vm85_vm0, %v225_v59 }
 0x304   :  { %v319_v3 = vpop.f32.mrf.mxu1 }
 0x305   :  { %v320_v4 = vadd.f32 %v319_v3, %v239_v1 }
 0x306   :  { %v321_v5 = vpop.f32.mrf.mxu1 }
 0x307   :  { %330 = vst [vmem:[#allocation9] sm:$0xff] %v320_v4  ;;  %v322_v6 = vadd.f32 %v321_v5, %v243_v2 }
 0x308   :  { %v325_v7 = vpop.f32.mrf.mxu1 }
 0x309   :  { %331 = vst [vmem:[#allocation9 + $0x8] sm:$0xff] %v322_v6  ;;  %v326_v8 = vadd.f32 %v325_v7, %v239_v1 }
 0x30a   :  { %v327_v9 = vpop.f32.mrf.mxu1 }
 0x30b   :  { %332 = vst [vmem:[#allocation9 + $0x10] sm:$0xff] %v326_v8  ;;  %v328_v10 = vadd.f32 %v327_v9, %v243_v2 }
 0x30d   :  { %333 = vst [vmem:[#allocation9 + $0x18] sm:$0xff] %v328_v10 }
 0x30e   :  { %464 = shalt.err (!%p461_p5)
}
 0x30f   :  { %345 = dma.vmem_to_hbm [thread:$0]  %s340_s23, 512, %s575_s7, [#allocation5], %s484_s1, %s484_s1, %s485_s16  }
 0x310   :  { %477 = dma.done.wait [#allocation5], 512  }
 0x311   :  { %478 = vsyncadd [#allocation5], 4294966784 }
 0x312   :  { %349 = vsyncpa [#allocation4], 1 }
 0x313   :  { %350 = vsyncpa [#allocation7], 1 }
 0x314   :  { %351 = vsyncpa [#allocation5], 1 }

// kernel: tpu_custom_call.1
= control target key start
LH: loop header
LB: loop body
LE: loop exit
PB: predicated region body
PF: predicated region fallthrough
CT: control target
= control target key end

     0   :  { %12 = vsyncpa [#allocation4], 0  ;;  %s568_s0 = inlined_call_operand.hbm [shape: f32[16,32], index: 0, kind: input, shape index: {}]   ;;  %s569_s1 = inlined_call_operand.hbm [shape: f32[32,32], index: 1, kind: input, shape index: {}]   ;;  %s570_s2 = inlined_call_operand.vmem [shape: f32[1,32], index: 2, kind: input, shape index: {}]   ;;  %s571_s3 = inlined_call_operand.vmem [shape: f32[1,32], index: 3, kind: input, shape index: {}]   ;;  %s572_s4 = inlined_call_operand.vmem [shape: f32[1,32], index: 4, kind: input, shape index: {}]   ;;  %s573_s5 = inlined_call_operand.hbm [shape: f32[32,256], index: 5, kind: input, shape index: {}]   ;;  %s574_s6 = inlined_call_operand.vmem [shape: f32[1,256], index: 6, kind: input, shape index: {}]   ;;  %s575_s7 = inlined_call_operand.hbm [shape: f32[16,256], index: 7, kind: output, shape index: {}]  }
   0x1   :  { %13 = vsyncpa [#allocation7], 0 }
   0x2   :  { %14 = vsyncpa [#allocation5], 0  ;;  %s479_s24 = smov [#allocation6]   ;;  %s480_s26 = smov [#allocation3]  }
   0x3   :  { %s32_s25 = sshll.u32 %s479_s24, 4  ;;  %s20_s27 = sshll.u32 %s480_s26, 4  ;;  %s33_s25 = int_to_ptr.vmem [resolvable:$true] %s32_s25  ;;  %s21_s27 = int_to_ptr.vmem [resolvable:$true] %s20_s27 }
   0x4   :  { %s401_s28 = scalar_lea.vmem %s33_s25, 512  ;;  %p406_p1 = scmp.lt.s32.totalorder %s33_s25, %s33_s25 }
   0x5   :  { %p402_p0 = scmp.ne.s32.totalorder %s33_s25, %s401_s28  ;;  %p407_p2 = scmp.lt.s32.totalorder %s401_s28, %s401_s28 }
   0x7   :  { %p408_p3 = por %p407_p2, %p406_p1 }
   0x9   :  { %p409_p4 = pnand %p408_p3, %p402_p0 }
   0xb   :  { %412 = shalt.err (!%p409_p4)
}
   0xc   :  { %s481_s29 = smov 128   ;;  %s482_s30 = smov 8  }
   0xd   :  { %38 = dma.hbm_to_vmem [thread:$0]  %s569_s1, 512, %s33_s25, [#allocation7], %s481_s29, %s481_s29, %s482_s30  }
   0xe   :  { %s421_s10 = scalar_lea.vmem %s21_s27, 256  ;;  %p426_p6 = scmp.lt.s32.totalorder %s21_s27, %s21_s27 }
   0xf   :  { %p422_p5 = scmp.ne.s32.totalorder %s21_s27, %s421_s10  ;;  %p427_p7 = scmp.lt.s32.totalorder %s421_s10, %s421_s10 }
  0x11   :  { %p428_p8 = por %p427_p7, %p426_p6 }
  0x13   :  { %p429_p9 = pnand %p428_p8, %p422_p5 }
  0x15   :  { %432 = shalt.err (!%p429_p9)
}
  0x16   :  { %26 = dma.hbm_to_vmem [thread:$0]  %s568_s0, 256, %s21_s27, [#allocation4], %s481_s29, %s481_s29, %s482_s30  }
  0x17   :  { %s483_s13 = smov [#allocation8]  }
  0x18   :  { %s50_s14 = sshll.u32 %s483_s13, 4  ;;  %s51_s14 = int_to_ptr.vmem [resolvable:$true] %s50_s14 }
  0x19   :  { %s441_s15 = scalar_lea.vmem %s51_s14, 1024  ;;  %p446_p11 = scmp.lt.s32.totalorder %s51_s14, %s51_s14 }
  0x1a   :  { %p442_p10 = scmp.ne.s32.totalorder %s51_s14, %s441_s15  ;;  %p447_p12 = scmp.lt.s32.totalorder %s441_s15, %s441_s15 }
  0x1c   :  { %p448_p13 = por %p447_p12, %p446_p11 }
  0x1e   :  { %p449_p0 = pnand %p448_p13, %p442_p10 }
  0x20   :  { %452 = shalt.err (!%p449_p0)
}
  0x21   :  { %s484_s1 = smov 256   ;;  %s485_s16 = smov 16  }
  0x22   :  { %56 = dma.hbm_to_vmem [thread:$0]  %s573_s5, 1024, %s51_s14, [#allocation7], %s484_s1, %s484_s1, %s485_s16  }
  0x23   :  { %473 = dma.done.wait [#allocation4], 256  }
  0x24   :  { %474 = vsyncadd [#allocation4], 4294967040 }
  0x25   :  { %475 = dma.done.wait [#allocation7], 1536  }
  0x26   :  { %476 = vsyncadd [#allocation7], 4294965760  ;;  %vm85_vm0 = vcmask 261120   ;;  %v77_v0 = vld [vmem:[#allocation6 + $0x18] sm:$0xff]  ;;  %v76_v1 = vld [vmem:[#allocation6 + $0x10] sm:$0xff]  ;;  %v486_v41 = vmov 0.0   ;;  %v236_v60 = vlaneseq }
  0x27   :  { %365 = vmatprep.subr.mxu0 %v77_v0  ;;  %v72_v2 = vld [vmem:[#allocation3] sm:$0xff]  ;;  %v75_v3 = vld [vmem:[#allocation6 + $0x8] sm:$0xff]  ;;  %v74_v4 = vld [vmem:[#allocation6] sm:$0xff]  ;;  %317 = vmatprep.mubr.f32.mxu1 %v486_v41  ;;  %s487_s22 = smov [#allocation9]  }
  0x28   :  { %366 = vmatpush3.msra.mxu0 %v77_v0  ;;  %373 = vmatprep.mubr.msk.f32.mxu0 %vm85_vm0, %v72_v2  ;;  %v73_v5 = vld [vmem:[#allocation3 + $0x8] sm:$0xff]  ;;  %v352_v6 = vld [vmem:[%s570_s2] ss:$0 sm:$0xff]  ;;  %v232_v34 = vld [vmem:[#allocation8 + $0x30] sm:$0xff]  ;;  %v237_v61 = vshrl.u32 %v236_v60, 7  ;;  %s339_s23 = sshll.u32 %s487_s22, 4  ;;  %s340_s23 = int_to_ptr.vmem [resolvable:$true] %s339_s23 }
  0x29   :  { %367 = vmatprep.subr.mxu0 %v76_v1  ;;  %v233_v33 = vld [vmem:[#allocation8 + $0x38] sm:$0xff]  ;;  %v231_v35 = vld [vmem:[#allocation8 + $0x28] sm:$0xff]  ;;  %v230_v36 = vld [vmem:[#allocation8 + $0x20] sm:$0xff]  ;;  %s453_s24 = scalar_lea.vmem %s340_s23, 512  ;;  %p458_p2 = scmp.lt.s32.totalorder %s340_s23, %s340_s23 }
  0x2a   :  { %368 = vmatpush3.msra.mxu0 %v76_v1  ;;  %277 = vmatprep.subr.mxu1 %v233_v33  ;;  %v229_v37 = vld [vmem:[#allocation8 + $0x18] sm:$0xff]  ;;  %v228_v38 = vld [vmem:[#allocation8 + $0x10] sm:$0xff]  ;;  %v227_v39 = vld [vmem:[#allocation8 + $0x8] sm:$0xff]  ;;  %v238_v62 = vsub.s32 0, %v237_v61  ;;  %v242_v0 = vsub.s32 1, %v237_v61  ;;  %p454_p1 = scmp.ne.s32.totalorder %s340_s23, %s453_s24  ;;  %p459_p3 = scmp.lt.s32.totalorder %s453_s24, %s453_s24 }
  0x2b   :  { %369 = vmatprep.subr.mxu0 %v75_v3  ;;  %278 = vmatpush1.msra.mxu1 %v232_v34  ;;  %v226_v40 = vld [vmem:[#allocation8] sm:$0xff] }
  0x2c   :  { %370 = vmatpush3.msra.mxu0 %v75_v3  ;;  %279 = vmatprep.subr.mxu1 %v231_v35  ;;  %v355_v49 = vld [vmem:[%s571_s3] ss:$0 sm:$0xff]  ;;  %p460_p4 = por %p459_p3, %p458_p2 }
  0x2d   :  { %371 = vmatprep.subr.mxu0 %v74_v4  ;;  %280 = vmatpush1.msra.mxu1 %v230_v36  ;;  %v356_v51 = vld [vmem:[%s572_s4] ss:$0 sm:$0xff] }
  0x2e   :  { %372 = vmatpush3.msra.mxu0 %v74_v4  ;;  %281 = vmatprep.subr.mxu1 %v229_v37  ;;  %v234_v63 = vld [vmem:[%s574_s6] sm:$0x3]  ;;  %p461_p5 = pnand %p460_p4, %p454_p1 }
  0x2f   :  { %374 = vmatmul.mubr.msk.f32.vlgmr.msra.gmra.mxu0 %vm85_vm0, %v73_v5  ;;  %282 = vmatpush1.msra.mxu1 %v228_v38  ;;  %v239_v1 = vrot.slane %v234_v63, %v238_v62  ;;  %v243_v2 = vrot.slane %v234_v63, %v242_v0 }
  0x30   :  { %283 = vmatprep.subr.mxu1 %v227_v39 }
  0x31   :  { %284 = vmatpush1.msra.mxu1 %v226_v40 }
  0xef   :  { %v375_v7 = vpop.f32.mrf.mxu0 }
  0xf0   :  { %v164_v8 = vadd.f32 %v375_v7, %v352_v6 }
  0xf1   :  { %v158_v9 = vpop.f32.mrf.mxu0 }
  0xf2   :  { %v170_v10 = vmul.f32 0.70710677, %v164_v8  ;;  %v159_v11 = vadd.f32 %v352_v6, %v158_v9  ;;  %v168_v18 = vmul.f32 0.5, %v164_v8 }
  0xf4   :  { %385 = verf.f32 %v170_v10  ;;  %v169_v12 = vmul.f32 0.70710677, %v159_v11  ;;  %v167_v15 = vmul.f32 0.5, %v159_v11 }
  0xf6   :  { %387 = verf.f32 %v169_v12 }
 0x101   :  { %v386_v13 = vpop.eup %385 }
 0x102   :  { %v174_v17 = vadd.f32 1.0, %v386_v13 }
 0x103   :  { %v388_v14 = vpop.eup %387 }
 0x104   :  { %v173_v16 = vadd.f32 1.0, %v388_v14  ;;  %v176_v21 = vmul.f32 %v174_v17, %v168_v18 }
 0x106   :  { %v175_v19 = vmul.f32 %v173_v16, %v167_v15  ;;  %v180_v22 = vsel %vm85_vm0, %v176_v21, 0.0 }
 0x108   :  { %v177_v20 = vsel %vm85_vm0, %v175_v19, 0.0 }
 0x109   :  { %178 = vadd.xlane.f32.xlu0 %v177_v20 }
 0x10d   :  { %181 = vadd.xlane.f32.xlu0 %v180_v22 }
 0x192   :  { %v179_v23 = vpop.xlane.xlu0 %178 }
 0x193   :  { %v184_v24 = vmul.f32 0.03125, %v179_v23 }
 0x195   :  { %v186_v25 = vsub.f32 %v175_v19, %v184_v24 }
 0x196   :  { %v182_v26 = vpop.xlane.xlu0 %181 }
 0x197   :  { %v185_v27 = vmul.f32 0.03125, %v182_v26  ;;  %v188_v28 = vmul.f32 %v186_v25, %v186_v25 }
 0x199   :  { %v187_v29 = vsub.f32 %v176_v21, %v185_v27  ;;  %v190_v30 = vsel %vm85_vm0, %v188_v28, 0.0 }
 0x19a   :  { %191 = vadd.xlane.f32.xlu1 %v190_v30 }
 0x19b   :  { %v189_v31 = vmul.f32 %v187_v29, %v187_v29 }
 0x19d   :  { %v193_v32 = vsel %vm85_vm0, %v189_v31, 0.0 }
 0x19e   :  { %194 = vadd.xlane.f32.xlu1 %v193_v32 }
 0x223   :  { %v192_v42 = vpop.xlane.xlu1 %191 }
 0x224   :  { %v196_v43 = vmul.f32 0.03125, %v192_v42 }
 0x226   :  { %v198_v44 = vadd.f32 1e-12, %v196_v43 }
 0x227   :  { %v195_v45 = vpop.xlane.xlu1 %194 }
 0x228   :  { %389 = vrsqrt.f32 %v198_v44  ;;  %v197_v46 = vmul.f32 0.03125, %v195_v45 }
 0x22a   :  { %v199_v47 = vadd.f32 1e-12, %v197_v46 }
 0x22c   :  { %391 = vrsqrt.f32 %v199_v47 }
 0x235   :  { %v390_v48 = vpop.eup %389 }
 0x236   :  { %v202_v50 = vmul.f32 %v390_v48, %v186_v25 }
 0x238   :  { %v211_v52 = vmul.f32 %v355_v49, %v202_v50 }
 0x239   :  { %v392_v53 = vpop.eup %391 }
 0x23a   :  { %v220_v54 = vadd.f32 %v356_v51, %v211_v52  ;;  %v203_v55 = vmul.f32 %v392_v53, %v187_v29 }
 0x23c   :  { %222 = vst.msk [vmem:[#allocation2] sm:$0xff] %vm85_vm0, %v220_v54  ;;  %v212_v56 = vmul.f32 %v355_v49, %v203_v55 }
 0x23e   :  { %v221_v57 = vadd.f32 %v356_v51, %v212_v56 }
 0x240   :  { %223 = vst.msk [vmem:[#allocation2 + $0x8] sm:$0xff] %vm85_vm0, %v221_v57 }
 0x243   :  { %v224_v58 = vld [vmem:[#allocation2] sm:$0xff] }
 0x244   :  { %357 = vmatmul.mubr.msk.f32.vlgmr.msra.gmra.mxu1 %vm85_vm0, %v224_v58 }
 0x245   :  { %323 = vmatprep.mubr.f32.mxu1 %v486_v41 }
 0x247   :  { %v225_v59 = vld [vmem:[#allocation2 + $0x8] sm:$0xff] }
 0x248   :  { %358 = vmatmul.mubr.msk.f32.gmra.mxu1 %vm85_vm0, %v225_v59 }
 0x304   :  { %v319_v3 = vpop.f32.mrf.mxu1 }
 0x305   :  { %v320_v4 = vadd.f32 %v319_v3, %v239_v1 }
 0x306   :  { %v321_v5 = vpop.f32.mrf.mxu1 }
 0x307   :  { %330 = vst [vmem:[#allocation9] sm:$0xff] %v320_v4  ;;  %v322_v6 = vadd.f32 %v321_v5, %v243_v2 }
 0x308   :  { %v325_v7 = vpop.f32.mrf.mxu1 }
 0x309   :  { %331 = vst [vmem:[#allocation9 + $0x8] sm:$0xff] %v322_v6  ;;  %v326_v8 = vadd.f32 %v325_v7, %v239_v1 }
 0x30a   :  { %v327_v9 = vpop.f32.mrf.mxu1 }
 0x30b   :  { %332 = vst [vmem:[#allocation9 + $0x10] sm:$0xff] %v326_v8  ;;  %v328_v10 = vadd.f32 %v327_v9, %v243_v2 }
 0x30d   :  { %333 = vst [vmem:[#allocation9 + $0x18] sm:$0xff] %v328_v10 }
 0x30e   :  { %464 = shalt.err (!%p461_p5)
}
 0x30f   :  { %345 = dma.vmem_to_hbm [thread:$0]  %s340_s23, 512, %s575_s7, [#allocation5], %s484_s1, %s484_s1, %s485_s16  }
 0x310   :  { %477 = dma.done.wait [#allocation5], 512  }
 0x311   :  { %478 = vsyncadd [#allocation5], 4294966784 }
 0x312   :  { %349 = vsyncpa [#allocation4], 1 }
 0x313   :  { %350 = vsyncpa [#allocation7], 1 }
 0x314   :  { %351 = vsyncpa [#allocation5], 1 }

</bundles_post_ra>
